<compile_context>
chip_gen: v6e
topology: v6e:2x2x1
jax: 0.10.0
libtpu: 0.0.40
codegen_flags: <defaults>
</compile_context>

<pallas_src>
import functools
import math

import jax
import jax.numpy as jnp
from jax.experimental import pallas as pl
from jax.experimental.pallas import tpu as pltpu

EPS = 1e-6


def _row_tile(m, pref=256):
    """Largest multiple-of-8 row tile <= pref that divides m (else m itself)."""
    if m <= pref:
        return m
    t = (pref // 8) * 8
    while t >= 8:
        if m % t == 0:
            return t
        t -= 8
    return m


def _ln_rows(x, g, b, eps):
    # torch-style LayerNorm: unbiased std (divide by d-1), eps added to the std.
    d = x.shape[-1]
    mean = jnp.mean(x, axis=-1, keepdims=True)
    var = jnp.sum((x - mean) ** 2, axis=-1, keepdims=True) * (1.0 / (d - 1))
    inv = pl.reciprocal(jnp.sqrt(var) + eps, approx=True)
    return g * (x - mean) * inv + b


# ---------------------------------------------------------------------------
# Kernel 1: fused LayerNorm + QKV projection      x[M,D] -> qkv[M,3D] (bf16)
# ---------------------------------------------------------------------------
def _ln_qkv_kernel(x_ref, g_ref, b_ref, w_ref, bias_ref, o_ref, *, eps):
    xn = _ln_rows(x_ref[...], g_ref[...], b_ref[...], eps)
    y = jnp.dot(xn.astype(jnp.bfloat16), w_ref[...],
                preferred_element_type=jnp.float32)
    o_ref[...] = (y + bias_ref[...]).astype(o_ref.dtype)


def ln_qkv(x2, g, b, w, bias):
    M, D = x2.shape
    N = w.shape[1]
    tm = _row_tile(M)
    return pl.pallas_call(
        functools.partial(_ln_qkv_kernel, eps=EPS),
        grid=(M // tm,),
        out_shape=jax.ShapeDtypeStruct((M, N), jnp.bfloat16),
        in_specs=[
            pl.BlockSpec((tm, D), lambda i: (i, 0)),
            pl.BlockSpec((1, D), lambda i: (0, 0)),
            pl.BlockSpec((1, D), lambda i: (0, 0)),
            pl.BlockSpec((D, N), lambda i: (0, 0)),   # weight stays VMEM-resident
            pl.BlockSpec((1, N), lambda i: (0, 0)),
        ],
        out_specs=pl.BlockSpec((tm, N), lambda i: (i, 0)),
        compiler_params=pltpu.CompilerParams(dimension_semantics=("parallel",)),
    )(x2, g.reshape(1, D), b.reshape(1, D), w, bias.reshape(1, N))


# ---------------------------------------------------------------------------
# Kernel 2: multi-head attention core, one batch (all heads) per grid step.
#   qkv[B,S,3D] (bf16), mask[B,1,S] -> out[B,S,D] (bf16, lane-dense [S,D] slab)
# ---------------------------------------------------------------------------
def _attn_kernel(qkv_ref, m_ref, o_ref, *, H, scale):
    qkv = qkv_ref[0]                      # [S, 3D] bf16
    D3 = qkv.shape[-1]
    D = D3 // 3
    Dh = D // H
    mask = m_ref[0]                       # [1, S] int32 (key positions)
    dn = (((1,), (1,)), ((), ()))         # q @ k^T without an explicit transpose
    outs = []
    for h in range(H):                    # static unroll over heads (in-VMEM slices)
        qh = qkv[:, h * Dh:(h + 1) * Dh]
        kh = qkv[:, D + h * Dh:D + (h + 1) * Dh]
        vh = qkv[:, 2 * D + h * Dh:2 * D + (h + 1) * Dh]
        s = jax.lax.dot_general(qh, kh, dn,
                                preferred_element_type=jnp.float32) * scale
        s = jnp.where(mask == 0, jnp.float32(-1e9), s)
        s = s - jnp.max(s, axis=-1, keepdims=True)
        p = jnp.exp(s)
        p = p * pl.reciprocal(jnp.sum(p, axis=-1, keepdims=True), approx=True)
        outs.append(jnp.dot(p.astype(jnp.bfloat16), vh,
                            preferred_element_type=jnp.float32))
    o_ref[0] = jnp.concatenate(outs, axis=-1).astype(o_ref.dtype)


def attention_core(qkv3, mask, H):
    B, S, D3 = qkv3.shape
    D = D3 // 3
    scale = 1.0 / math.sqrt(D // H)
    return pl.pallas_call(
        functools.partial(_attn_kernel, H=H, scale=scale),
        grid=(B,),
        out_shape=jax.ShapeDtypeStruct((B, S, D), jnp.bfloat16),
        in_specs=[
            pl.BlockSpec((1, S, D3), lambda b: (b, 0, 0)),
            pl.BlockSpec((1, 1, S), lambda b: (b, 0, 0)),   # no [B*H,1,S] broadcast in HBM
        ],
        out_specs=pl.BlockSpec((1, S, D), lambda b: (b, 0, 0)),
        compiler_params=pltpu.CompilerParams(dimension_semantics=("parallel",)),
    )(qkv3, mask)


# ---------------------------------------------------------------------------
# Kernel 3: attention output projection + residual    y = x + attn @ Wo + bo
# ---------------------------------------------------------------------------
def _proj_res_kernel(a_ref, x_ref, w_ref, b_ref, o_ref):
    y = jnp.dot(a_ref[...], w_ref[...], preferred_element_type=jnp.float32)
    o_ref[...] = x_ref[...] + y + b_ref[...]


def proj_residual(attn2, x2, w, bias):
    M, D = x2.shape
    tm = _row_tile(M)
    return pl.pallas_call(
        _proj_res_kernel,
        grid=(M // tm,),
        out_shape=jax.ShapeDtypeStruct((M, D), jnp.float32),
        in_specs=[
            pl.BlockSpec((tm, D), lambda i: (i, 0)),
            pl.BlockSpec((tm, D), lambda i: (i, 0)),
            pl.BlockSpec((D, D), lambda i: (0, 0)),
            pl.BlockSpec((1, D), lambda i: (0, 0)),
        ],
        out_specs=pl.BlockSpec((tm, D), lambda i: (i, 0)),
        compiler_params=pltpu.CompilerParams(dimension_semantics=("parallel",)),
    )(attn2, x2, w, bias.reshape(1, D))


# ---------------------------------------------------------------------------
# Kernel 4: fused LayerNorm + position-wise FFN + residual
#   y = x + relu(LN(x) @ W1 + b1) @ W2 + b2   ([tm, d_ff] hidden stays in VMEM)
# ---------------------------------------------------------------------------
def _ln_ffn_res_kernel(x_ref, g_ref, b_ref, w1_ref, b1_ref, w2_ref, b2_ref,
                       o_ref, *, eps):
    x = x_ref[...]
    xn = _ln_rows(x, g_ref[...], b_ref[...], eps)
    h = jnp.dot(xn.astype(jnp.bfloat16), w1_ref[...],
                preferred_element_type=jnp.float32)
    h = jnp.maximum(h + b1_ref[...], 0.0)
    y = jnp.dot(h.astype(jnp.bfloat16), w2_ref[...],
                preferred_element_type=jnp.float32)
    o_ref[...] = x + y + b2_ref[...]


def ln_ffn_residual(x2, g, b, w1, b1, w2, b2):
    M, D = x2.shape
    F = w1.shape[1]
    tm = _row_tile(M)
    return pl.pallas_call(
        functools.partial(_ln_ffn_res_kernel, eps=EPS),
        grid=(M // tm,),
        out_shape=jax.ShapeDtypeStruct((M, D), jnp.float32),
        in_specs=[
            pl.BlockSpec((tm, D), lambda i: (i, 0)),
            pl.BlockSpec((1, D), lambda i: (0, 0)),
            pl.BlockSpec((1, D), lambda i: (0, 0)),
            pl.BlockSpec((D, F), lambda i: (0, 0)),
            pl.BlockSpec((1, F), lambda i: (0, 0)),
            pl.BlockSpec((F, D), lambda i: (0, 0)),
            pl.BlockSpec((1, D), lambda i: (0, 0)),
        ],
        out_specs=pl.BlockSpec((tm, D), lambda i: (i, 0)),
        compiler_params=pltpu.CompilerParams(dimension_semantics=("parallel",)),
    )(x2, g.reshape(1, D), b.reshape(1, D), w1, b1.reshape(1, F),
      w2, b2.reshape(1, D))


# ---------------------------------------------------------------------------
# EncoderLayer forward (reshapes are free; all heavy lifting is in Pallas)
# ---------------------------------------------------------------------------
def encoder_layer_forward(x, mask, p, H):
    B, S, D = x.shape
    M = B * S
    x2 = x.reshape(M, D)
    # sublayer[0]: x + self_attn(norm(x), norm(x), norm(x), mask)
    qkv = ln_qkv(x2, p["ln1_g"], p["ln1_b"], p["wqkv"], p["bqkv"])      # [M,3D] bf16
    attn = attention_core(qkv.reshape(B, S, 3 * D), mask, H)            # [B,S,D] bf16
    x2 = proj_residual(attn.reshape(M, D), x2, p["wo"], p["bo"])        # [M,D]  f32
    # sublayer[1]: x + feed_forward(norm(x))
    x2 = ln_ffn_residual(x2, p["ln2_g"], p["ln2_b"],
                         p["w1"], p["b1"], p["w2"], p["b2"])            # [M,D]  f32
    return x2.reshape(B, S, D)


# ---------------------------------------------------------------------------
# Pure-JAX f32 reference (same math / same bf16-valued weights, f32 activations)
# ---------------------------------------------------------------------------
def ref_layernorm(x, g, b, eps=EPS):
    mean = x.mean(-1, keepdims=True)
    var = ((x - mean) ** 2).sum(-1, keepdims=True) / (x.shape[-1] - 1)
    return g * (x - mean) / (jnp.sqrt(var) + eps) + b


def ref_forward(x, mask, p, H):
    B, S, D = x.shape
    Dh = D // H

    def lin(t, w, bias):
        return t @ w.astype(jnp.float32) + bias

    xn = ref_layernorm(x, p["ln1_g"], p["ln1_b"])
    qkv = lin(xn, p["wqkv"], p["bqkv"])
    q, k, v = jnp.split(qkv, 3, axis=-1)
    q = q.reshape(B, S, H, Dh).transpose(0, 2, 1, 3)
    k = k.reshape(B, S, H, Dh).transpose(0, 2, 1, 3)
    v = v.reshape(B, S, H, Dh).transpose(0, 2, 1, 3)
    scores = jnp.einsum("bhqd,bhkd->bhqk", q, k) / math.sqrt(Dh)
    scores = jnp.where(mask[:, None, :, :] == 0, -1e9, scores)
    pattn = jax.nn.softmax(scores, axis=-1)
    o = jnp.einsum("bhqk,bhkd->bhqd", pattn, v).transpose(0, 2, 1, 3).reshape(B, S, D)
    x = x + lin(o, p["wo"], p["bo"])
    xn = ref_layernorm(x, p["ln2_g"], p["ln2_b"])
    x = x + lin(jnp.maximum(lin(xn, p["w1"], p["b1"]), 0.0), p["w2"], p["b2"])
    return x


# ---------------------------------------------------------------------------
def init_params(key, D, d_ff):
    keys = jax.random.split(key, 10)
    bf16 = jnp.bfloat16
    wq = 0.1 * jax.random.normal(keys[0], (D, D), jnp.float32)
    wk = 0.1 * jax.random.normal(keys[1], (D, D), jnp.float32)
    wv = 0.1 * jax.random.normal(keys[2], (D, D), jnp.float32)
    return {
        "ln1_g": jnp.ones((D,), jnp.float32), "ln1_b": jnp.zeros((D,), jnp.float32),
        "ln2_g": jnp.ones((D,), jnp.float32), "ln2_b": jnp.zeros((D,), jnp.float32),
        # fused QKV projection weight [D, 3D]; matmul weights stored in bf16
        "wqkv": jnp.concatenate([wq, wk, wv], axis=1).astype(bf16),
        "bqkv": 0.02 * jax.random.normal(keys[3], (3 * D,), jnp.float32),
        "wo": (0.1 * jax.random.normal(keys[4], (D, D), jnp.float32)).astype(bf16),
        "bo": 0.02 * jax.random.normal(keys[5], (D,), jnp.float32),
        "w1": (0.1 * jax.random.normal(keys[6], (D, d_ff), jnp.float32)).astype(bf16),
        "b1": 0.02 * jax.random.normal(keys[7], (d_ff,), jnp.float32),
        "w2": (0.1 * jax.random.normal(keys[8], (d_ff, D), jnp.float32)).astype(bf16),
        "b2": 0.02 * jax.random.normal(keys[9], (D,), jnp.float32),
    }


if __name__ == "__main__":
    B, S, D, H, d_ff = 2, 8, 32, 4, 64

    key = jax.random.PRNGKey(0)
    kx, kp = jax.random.split(key)
    x = jax.random.normal(kx, (B, S, D), jnp.float32)
    # key-padding mask [B, 1, S]: batch 0 attends to all 8 tokens, batch 1 to first 6
    lengths = jnp.array([8, 6], jnp.int32)
    mask = (jnp.arange(S)[None, None, :] < lengths[:, None, None]).astype(jnp.int32)

    params = init_params(kp, D, d_ff)

    out = encoder_layer_forward(x, mask, params, H)
    out = jax.block_until_ready(out)

    ref = ref_forward(x, mask, params, H)
    assert out.shape == (B, S, D)
    max_err = float(jnp.max(jnp.abs(out - ref)))
    # bf16 matmul inputs + approx reciprocals vs. f32 reference -> loosened tolerance
    assert jnp.allclose(out, ref, atol=3e-2, rtol=3e-2), max_err

    print("KERNEL_OK")
</pallas_src>

<mosaic_0001>
module attributes {stable_mosaic.version = 11 : i64} {
  func.func @_ln_qkv_kernel(%arg0: i32, %arg1: memref<16x32xf32, #tpu.memory_space<vmem>>, %arg2: memref<1x32xf32, #tpu.memory_space<vmem>>, %arg3: memref<1x32xf32, #tpu.memory_space<vmem>>, %arg4: memref<32x96xbf16, #tpu.memory_space<vmem>>, %arg5: memref<1x96xf32, #tpu.memory_space<vmem>>, %arg6: memref<16x96xbf16, #tpu.memory_space<vmem>>) attributes {dimension_semantics = [#tpu.dimension_semantics<parallel>], iteration_bounds = array<i64: 1>, scalar_prefetch = 0 : i64, scratch_operands = 0 : i64, tpu.core_type = #tpu.core_type<tc>, window_params = [{transform_indices = @transform_0, window_bounds = array<i64: 16, 32>}, {pipeline_mode = #tpu.pipeline_mode<synchronous>, transform_indices = @transform_1, window_bounds = array<i64: 1, 32>}, {pipeline_mode = #tpu.pipeline_mode<synchronous>, transform_indices = @transform_2, window_bounds = array<i64: 1, 32>}, {pipeline_mode = #tpu.pipeline_mode<synchronous>, transform_indices = @transform_3, window_bounds = array<i64: 32, 96>}, {pipeline_mode = #tpu.pipeline_mode<synchronous>, transform_indices = @transform_4, window_bounds = array<i64: 1, 96>}, {transform_indices = @transform_5, window_bounds = array<i64: 16, 96>}]} {
    %c0 = arith.constant 0 : index
    %c0_0 = arith.constant 0 : index
    %0 = vector.load %arg1[%c0, %c0_0] : memref<16x32xf32, #tpu.memory_space<vmem>>, vector<16x32xf32>
    %c0_1 = arith.constant 0 : index
    %c0_2 = arith.constant 0 : index
    %1 = vector.load %arg2[%c0_1, %c0_2] : memref<1x32xf32, #tpu.memory_space<vmem>>, vector<1x32xf32>
    %c0_3 = arith.constant 0 : index
    %c0_4 = arith.constant 0 : index
    %2 = vector.load %arg3[%c0_3, %c0_4] : memref<1x32xf32, #tpu.memory_space<vmem>>, vector<1x32xf32>
    %cst = arith.constant dense<0.000000e+00> : vector<16xf32>
    %3 = vector.multi_reduction <add>, %0, %cst [1] : vector<16x32xf32> to vector<16xf32>
    %4 = vector.shape_cast %3 : vector<16xf32> to vector<16x1xf32>
    %cst_5 = arith.constant 3.200000e+01 : f32
    %5 = vector.broadcast %cst_5 : f32 to vector<16x1xf32>
    %6 = arith.divf %4, %5 : vector<16x1xf32>
    %7 = vector.broadcast %6 : vector<16x1xf32> to vector<16x32xf32>
    %8 = arith.subf %0, %7 : vector<16x32xf32>
    %9 = arith.mulf %8, %8 : vector<16x32xf32>
    %cst_6 = arith.constant dense<0.000000e+00> : vector<16xf32>
    %10 = vector.multi_reduction <add>, %9, %cst_6 [1] : vector<16x32xf32> to vector<16xf32>
    %11 = vector.shape_cast %10 : vector<16xf32> to vector<16x1xf32>
    %cst_7 = arith.constant 0.0322580636 : f32
    %12 = vector.broadcast %cst_7 : f32 to vector<16x1xf32>
    %13 = arith.mulf %11, %12 : vector<16x1xf32>
    %14 = math.sqrt %13 : vector<16x1xf32>
    %cst_8 = arith.constant 9.99999997E-7 : f32
    %15 = vector.broadcast %cst_8 : f32 to vector<16x1xf32>
    %16 = arith.addf %14, %15 : vector<16x1xf32>
    %17 = tpu.reciprocal %16 {approx = true} : vector<16x1xf32> -> vector<16x1xf32>
    %18 = vector.broadcast %6 : vector<16x1xf32> to vector<16x32xf32>
    %19 = arith.subf %0, %18 : vector<16x32xf32>
    %20 = vector.broadcast %1 : vector<1x32xf32> to vector<16x32xf32>
    %21 = arith.mulf %20, %19 : vector<16x32xf32>
    %22 = vector.broadcast %17 : vector<16x1xf32> to vector<16x32xf32>
    %23 = arith.mulf %21, %22 : vector<16x32xf32>
    %24 = vector.broadcast %2 : vector<1x32xf32> to vector<16x32xf32>
    %25 = arith.addf %23, %24 : vector<16x32xf32>
    %26 = arith.truncf %25 : vector<16x32xf32> to vector<16x32xbf16>
    %c0_9 = arith.constant 0 : index
    %c0_10 = arith.constant 0 : index
    %27 = vector.load %arg4[%c0_9, %c0_10] : memref<32x96xbf16, #tpu.memory_space<vmem>>, vector<32x96xbf16>
    %cst_11 = arith.constant dense<0.000000e+00> : vector<16x96xf32>
    %28 = tpu.matmul %26, %27, %cst_11 {dimension_numbers = #tpu.dot_dimension_numbers<[1], [0], [0], [1], [0, 0, 1, 1], [], []>} : vector<16x32xbf16>, vector<32x96xbf16>, vector<16x96xf32> -> vector<16x96xf32>
    %c0_12 = arith.constant 0 : index
    %c0_13 = arith.constant 0 : index
    %29 = vector.load %arg5[%c0_12, %c0_13] : memref<1x96xf32, #tpu.memory_space<vmem>>, vector<1x96xf32>
    %30 = vector.broadcast %29 : vector<1x96xf32> to vector<16x96xf32>
    %31 = arith.addf %28, %30 : vector<16x96xf32>
    %32 = arith.truncf %31 : vector<16x96xf32> to vector<16x96xbf16>
    %c0_14 = arith.constant 0 : index
    %c0_15 = arith.constant 0 : index
    %33 = vector.load %arg6[%c0_14, %c0_15] : memref<16x96xbf16, #tpu.memory_space<vmem>>, vector<16x96xbf16>
    tpu.vector_store %arg6[%c0_14, %c0_15], %32 {strides = array<i32>} : memref<16x96xbf16, #tpu.memory_space<vmem>>, vector<16x96xbf16>,
    return
  }
  func.func @transform_0(%arg0: i32) -> (i32, i32) {
    %c0_i32 = arith.constant 0 : i32
    %c0_i32_0 = arith.constant 0 : i32
    return %arg0, %c0_i32 : i32, i32
  }
  func.func @transform_1(%arg0: i32) -> (i32, i32) {
    %c0_i32 = arith.constant 0 : i32
    %c0_i32_0 = arith.constant 0 : i32
    %c0_i32_1 = arith.constant 0 : i32
    return %c0_i32, %c0_i32_0 : i32, i32
  }
  func.func @transform_2(%arg0: i32) -> (i32, i32) {
    %c0_i32 = arith.constant 0 : i32
    %c0_i32_0 = arith.constant 0 : i32
    %c0_i32_1 = arith.constant 0 : i32
    return %c0_i32, %c0_i32_0 : i32, i32
  }
  func.func @transform_3(%arg0: i32) -> (i32, i32) {
    %c0_i32 = arith.constant 0 : i32
    %c0_i32_0 = arith.constant 0 : i32
    %c0_i32_1 = arith.constant 0 : i32
    return %c0_i32, %c0_i32_0 : i32, i32
  }
  func.func @transform_4(%arg0: i32) -> (i32, i32) {
    %c0_i32 = arith.constant 0 : i32
    %c0_i32_0 = arith.constant 0 : i32
    %c0_i32_1 = arith.constant 0 : i32
    return %c0_i32, %c0_i32_0 : i32, i32
  }
  func.func @transform_5(%arg0: i32) -> (i32, i32) {
    %c0_i32 = arith.constant 0 : i32
    %c0_i32_0 = arith.constant 0 : i32
    return %arg0, %c0_i32 : i32, i32
  }
}

</mosaic_0001>

<bundles_post_ra>
// kernel: tpu_custom_call.1
= control target key start
LH: loop header
LB: loop body
LE: loop exit
PB: predicated region body
PF: predicated region fallthrough
CT: control target
= control target key end

     0   :  { %10 = vsyncpa [#allocation3], 0  ;;  %s383_s0 = inlined_call_operand.hbm [shape: f32[16,32], index: 0, kind: input, shape index: {}]   ;;  %s384_s1 = inlined_call_operand.vmem [shape: f32[1,32], index: 1, kind: input, shape index: {}]   ;;  %s385_s2 = inlined_call_operand.vmem [shape: f32[1,32], index: 2, kind: input, shape index: {}]   ;;  %s386_s3 = inlined_call_operand.hbm [shape: bf16[32,96], index: 3, kind: input, shape index: {}]   ;;  %s387_s4 = inlined_call_operand.vmem [shape: f32[1,96], index: 4, kind: input, shape index: {}]   ;;  %s388_s5 = inlined_call_operand.hbm [shape: bf16[16,96], index: 5, kind: output, shape index: {}]  }
   0x1   :  { %11 = vsyncpa [#allocation6], 0 }
   0x2   :  { %12 = vsyncpa [#allocation4], 0  ;;  %s315_s18 = smov [#allocation2]  }
   0x3   :  { %s18_s19 = sshll.u32 %s315_s18, 4  ;;  %s19_s19 = int_to_ptr.vmem [resolvable:$true] %s18_s19 }
   0x4   :  { %s257_s20 = scalar_lea.vmem %s19_s19, 256  ;;  %p262_p1 = scmp.lt.s32.totalorder %s19_s19, %s19_s19 }
   0x5   :  { %p258_p0 = scmp.ne.s32.totalorder %s19_s19, %s257_s20  ;;  %p263_p2 = scmp.lt.s32.totalorder %s257_s20, %s257_s20 }
   0x7   :  { %p264_p3 = por %p263_p2, %p262_p1 }
   0x9   :  { %p265_p4 = pnand %p264_p3, %p258_p0 }
   0xb   :  { %268 = shalt.err (!%p265_p4)
}
   0xc   :  { %s316_s21 = smov 128   ;;  %s317_s22 = smov 8  }
   0xd   :  { %24 = dma.hbm_to_vmem [thread:$0]  %s383_s0, 256, %s19_s19, [#allocation3], %s316_s21, %s316_s21, %s317_s22  }
   0xe   :  { %s318_s25 = smov [#allocation5]  }
   0xf   :  { %s34_s26 = sshll.u32 %s318_s25, 4  ;;  %s35_s26 = int_to_ptr.vmem [resolvable:$true] %s34_s26 }
  0x10   :  { %s277_s27 = scalar_lea.vmem %s35_s26, 256  ;;  %p282_p6 = scmp.lt.s32.totalorder %s35_s26, %s35_s26 }
  0x11   :  { %p278_p5 = scmp.ne.s32.totalorder %s35_s26, %s277_s27  ;;  %p283_p7 = scmp.lt.s32.totalorder %s277_s27, %s277_s27 }
  0x13   :  { %p284_p8 = por %p283_p7, %p282_p6 }
  0x15   :  { %p285_p9 = pnand %p284_p8, %p278_p5 }
  0x17   :  { %288 = shalt.err (!%p285_p9)
}
  0x18   :  { %s319_s28 = smov 64   ;;  %s320_s29 = smov 4  }
  0x19   :  { %40 = dma.hbm_to_vmem [thread:$0]  %s386_s3, 256, %s35_s26, [#allocation6], %s319_s28, %s319_s28, %s320_s29  }
  0x1a   :  { %309 = dma.done.wait [#allocation3], 256  }
  0x1b   :  { %310 = vsyncadd [#allocation3], 4294967040 }
  0x1c   :  { %311 = dma.done.wait [#allocation6], 256  }
  0x1d   :  { %312 = vsyncadd [#allocation6], 4294967040  ;;  %vm54_vm0 = vcmask 261120   ;;  %v50_v0 = vld [vmem:[#allocation2] sm:$0xff]  ;;  %v51_v1 = vld [vmem:[#allocation2 + $0x8] sm:$0xff]  ;;  %v321_v15 = vmov 0.0  }
  0x1e   :  { %v55_v2 = vsel %vm54_vm0, %v50_v0, 0.0  ;;  %v58_v3 = vsel %vm54_vm0, %v51_v1, 0.0  ;;  %v239_v14 = vld [vmem:[#allocation5 + $0x8] sm:$0xff]   ;;  %222 = vmatprep.subr.bf16.mxu0 %v321_v15  ;;  %vm322_vm1 = vmmov 0   ;;  %v240_v16 = vld [vmem:[#allocation5] sm:$0xff]   ;;  %vm188_vm6 = vcmask 781312  }
  0x1f   :  { %56 = vadd.xlane.f32.xlu0 %v55_v2  ;;  %226 = vmatprep.mubr.msk.bf16.mxu0 %vm322_vm1, %v321_v15  ;;  %v209_v33 = vld [vmem:[%s384_s1] ss:$0 sm:$0xff]  ;;  %s323_s1 = smov [#allocation7]  }
  0x20   :  { %223 = vmatpush3.bf16.msra.mxu0 %v239_v14  ;;  %v210_v39 = vld [vmem:[%s385_s2] ss:$0 sm:$0xff]  ;;  %s196_s11 = sshll.u32 %s323_s1, 4  ;;  %s197_s11 = int_to_ptr.vmem [resolvable:$true] %s196_s11 }
  0x21   :  { %224 = vmatprep.subr.bf16.mxu0 %v321_v15  ;;  %v211_v44 = vld [vmem:[%s387_s4] ss:$0 sm:$0xff]  ;;  %s289_s2 = scalar_lea.vmem %s197_s11, 128  ;;  %p294_p11 = scmp.lt.s32.totalorder %s197_s11, %s197_s11 }
  0x22   :  { %p290_p10 = scmp.ne.s32.totalorder %s197_s11, %s289_s2  ;;  %p295_p12 = scmp.lt.s32.totalorder %s289_s2, %s289_s2 }
  0x23   :  { %59 = vadd.xlane.f32.xlu0 %v58_v3 }
  0x24   :  { %225 = vmatpush3.bf16.msra.mxu0 %v240_v16  ;;  %p296_p13 = por %p295_p12, %p294_p11 }
  0x26   :  { %p297_p0 = pnand %p296_p13, %p290_p10 }
  0xa8   :  { %v57_v4 = vpop.xlane.xlu0 %56 }
  0xa9   :  { %v62_v5 = vmul.f32 0.03125, %v57_v4 }
  0xab   :  { %v64_v6 = vsub.f32 %v50_v0, %v62_v5 }
  0xac   :  { %v60_v7 = vpop.xlane.xlu0 %59 }
  0xad   :  { %v63_v8 = vmul.f32 0.03125, %v60_v7  ;;  %v66_v9 = vmul.f32 %v64_v6, %v64_v6  ;;  %v100_v35 = vmul.f32 %v209_v33, %v64_v6 }
  0xaf   :  { %v65_v10 = vsub.f32 %v51_v1, %v63_v8  ;;  %v68_v11 = vsel %vm54_vm0, %v66_v9, 0.0 }
  0xb0   :  { %69 = vadd.xlane.f32.xlu1 %v68_v11 }
  0xb1   :  { %v67_v12 = vmul.f32 %v65_v10, %v65_v10  ;;  %v101_v36 = vmul.f32 %v209_v33, %v65_v10 }
  0xb3   :  { %v71_v13 = vsel %vm54_vm0, %v67_v12, 0.0 }
  0xb4   :  { %72 = vadd.xlane.f32.xlu1 %v71_v13 }
 0x139   :  { %v70_v17 = vpop.xlane.xlu1 %69 }
 0x13a   :  { %v74_v18 = vmul.f32 0.032258064, %v70_v17 }
 0x13c   :  { %241 = vrsqrt.f32 %v74_v18  ;;  %vm78_vm2 = vcmp.eq.f32.partialorder %v74_v18, inf  ;;  %v81_v23 = vand.u32 2147483648, %v74_v18  ;;  %vm80_vm3 = vcmp.eq.f32.partialorder %v74_v18, 0.0 }
 0x13d   :  { %v73_v19 = vpop.xlane.xlu1 %72 }
 0x13e   :  { %v75_v20 = vmul.f32 0.032258064, %v73_v19 }
 0x140   :  { %243 = vrsqrt.f32 %v75_v20  ;;  %vm85_vm4 = vcmp.eq.f32.partialorder %v75_v20, inf  ;;  %v88_v29 = vand.u32 2147483648, %v75_v20  ;;  %vm87_vm5 = vcmp.eq.f32.partialorder %v75_v20, 0.0 }
 0x149   :  { %v242_v21 = vpop.eup %241 }
 0x14a   :  { %v77_v22 = vmul.f32 %v242_v21, %v74_v18 }
 0x14c   :  { %v79_v24 = vsel %vm78_vm2, %v74_v18, %v77_v22 }
 0x14d   :  { %v244_v25 = vpop.eup %243  ;;  %v82_v26 = vsel %vm80_vm3, %v81_v23, %v79_v24 }
 0x14e   :  { %v90_v27 = vadd.f32 1e-06, %v82_v26  ;;  %v84_v28 = vmul.f32 %v244_v25, %v75_v20 }
 0x150   :  { %245 = vrcp.f32 %v90_v27  ;;  %v86_v30 = vsel %vm85_vm4, %v75_v20, %v84_v28 }
 0x151   :  { %v89_v31 = vsel %vm87_vm5, %v88_v29, %v86_v30 }
 0x152   :  { %v91_v32 = vadd.f32 1e-06, %v89_v31 }
 0x154   :  { %247 = vrcp.f32 %v91_v32 }
 0x15d   :  { %v246_v34 = vpop.eup %245 }
 0x15e   :  { %v102_v37 = vmul.f32 %v246_v34, %v100_v35 }
 0x160   :  { %v110_v41 = vadd.f32 %v210_v39, %v102_v37 }
 0x161   :  { %v248_v38 = vpop.eup %247 }
 0x162   :  { %v103_v40 = vmul.f32 %v248_v38, %v101_v36 }
 0x164   :  { %v111_v42 = vadd.f32 %v210_v39, %v103_v40 }
 0x166   :  { %v112_v43 = vpack.c.bf16 %v111_v42, %v110_v41 }
 0x168   :  { %227 = vmatmul.mubr.msk.bf16.vlgmr.msra.gmra.mxu0 %vm54_vm0, %v112_v43 }
 0x228   :  { %v173_v45 = vpop.f32.mrf.mxu0 }
 0x229   :  { %v174_v46 = vadd.f32 %v211_v44, %v173_v45 }
 0x22a   :  { %v228_v47 = vpop.f32.mrf.mxu0 }
 0x22b   :  { %v217_v48 = vpack.c.bf16 %v174_v46, %v174_v46 }
 0x22c   :  { %v176_v49 = vpop.f32.mrf.mxu0 }
 0x22d   :  { %v177_v50 = vadd.f32 %v211_v44, %v176_v49  ;;  %189 = vst.msk [vmem:[#allocation7] sm:$0xf] %vm188_vm6, %v217_v48 }
 0x22e   :  { %v229_v51 = vpop.f32.mrf.mxu0 }
 0x22f   :  { %v218_v52 = vpack.c.bf16 %v177_v50, %v177_v50 }
 0x231   :  { %190 = vst.msk [vmem:[#allocation7 + $0x4] sm:$0xf] %vm188_vm6, %v218_v52 }
 0x232   :  { %300 = shalt.err (!%p297_p0)
}
 0x233   :  { %202 = dma.vmem_to_hbm [thread:$0]  %s197_s11, 128, %s388_s5, [#allocation4], %s319_s28, %s319_s28, %s320_s29  }
 0x234   :  { %313 = dma.done.wait [#allocation4], 128  }
 0x235   :  { %314 = vsyncadd [#allocation4], 4294967168 }
 0x236   :  { %206 = vsyncpa [#allocation3], 1 }
 0x237   :  { %207 = vsyncpa [#allocation6], 1 }
 0x238   :  { %208 = vsyncpa [#allocation4], 1 }

</bundles_post_ra>
